<compile_context>
chip_gen: v5e
topology: v5e:2x2
jax: 0.10.0
libtpu: 0.0.40
codegen_flags: <defaults>
</compile_context>

<pallas_src>
import functools

import jax
import jax.numpy as jnp
from jax.experimental import pallas as pl
from jax.experimental.pallas import tpu as pltpu

LANE = 128


def _round_up(x, m):
    return (x + m - 1) // m * m


def rnn_step_kernel(gathered_ref, starts_ref, ends_ref, hidden_ref,
                    w_cat_ref, b_cat_ref, out_ref, *, h_pad):
    gathered = gathered_ref[...]                       # (N_idx, D) f32
    hidden = hidden_ref[...]                           # (B, H)     f32
    starts = starts_ref[...]                           # (B, 1)     int32
    ends = ends_ref[...]                               # (B, 1)     int32

    num_bags = hidden.shape[0]
    n_idx = gathered.shape[0]

    # EmbeddingBag(mode="mean"): build the (B, N_idx) bag-membership mask
    # in-kernel from the offsets (no host-built bag matrix shipped per step).
    idx = jax.lax.broadcasted_iota(jnp.int32, (num_bags, n_idx), 1)
    in_bag = ((idx >= starts) & (idx < ends)).astype(jnp.float32)
    counts = jnp.maximum(jnp.sum(in_bag, axis=1, keepdims=True), 1.0)
    bag = in_bag / counts                              # mean-pool weights
    emb = jnp.dot(bag, gathered, preferred_element_type=jnp.float32)   # (B, D)

    # One fused matmul replaces the four small i2h/i2o matmuls:
    #   cat(emb, hidden) @ [W_i2h^T | 0 | W_i2o^T | 0] + fused bias
    combined = jnp.concatenate([emb, hidden], axis=1)                  # (B, D+H)
    fused = (jnp.dot(combined, w_cat_ref[...], preferred_element_type=jnp.float32)
             + b_cat_ref[...])                                         # (B, h_pad+o_pad)

    hid_part = fused[:, :h_pad]      # new hidden, zero-padded to 128 lanes
    logits = fused[:, h_pad:]        # logits, pad lanes hold -inf (from bias)

    # Numerically-stable LogSoftmax over the last axis; -inf pad lanes
    # contribute exp(.) = 0 and never win the max, so they don't perturb lse.
    m = jnp.max(logits, axis=-1, keepdims=True)
    z = logits - m
    lse = jnp.log(jnp.sum(jnp.exp(z), axis=-1, keepdims=True))
    logp = z - lse

    # Single lane-dense (B, 2*128) store — no sub-128-lane masked stores.
    out_ref[...] = jnp.concatenate([hid_part, logp], axis=1).astype(out_ref.dtype)


def prepare_params(w_i2h, b_i2h, w_i2o, b_i2o):
    """One-time (hoisted) weight preprocessing: split/transpose/pad/fuse."""
    hidden_size, fan_in = w_i2h.shape
    output_size = w_i2o.shape[0]
    h_pad = _round_up(hidden_size, LANE)
    o_pad = _round_up(output_size, LANE)

    w_cat = jnp.zeros((fan_in, h_pad + o_pad), jnp.float32)
    w_cat = w_cat.at[:, :hidden_size].set(w_i2h.T.astype(jnp.float32))
    w_cat = w_cat.at[:, h_pad:h_pad + output_size].set(w_i2o.T.astype(jnp.float32))

    # Fused bias: real biases in the valid lanes, 0 in the hidden padding,
    # -inf in the logit padding so padded columns vanish in the log-softmax.
    b_cat = jnp.full((1, h_pad + o_pad), -jnp.inf, jnp.float32)
    b_cat = b_cat.at[0, :h_pad].set(0.0)
    b_cat = b_cat.at[0, :hidden_size].set(b_i2h.astype(jnp.float32))
    b_cat = b_cat.at[0, h_pad:h_pad + output_size].set(b_i2o.astype(jnp.float32))

    dims = (hidden_size, output_size, h_pad, o_pad)
    return w_cat, b_cat, dims


def rnn_forward(embeddings, indices, offsets, hidden, w_cat, b_cat, dims):
    """Mirrors RNN.forward(input_, hidden) with self.offset_input = offsets.

    `w_cat`, `b_cat`, `dims` come from a single prepare_params() call and are
    reused across every timestep.
    """
    hidden_size, output_size, h_pad, o_pad = dims
    n_idx = indices.shape[0]
    num_bags = offsets.shape[0]

    # Plain-JAX glue: row gather + per-bag [start, end) bounds.
    gathered = embeddings[indices].astype(jnp.float32)                 # (N_idx, D)
    starts = offsets.astype(jnp.int32).reshape(num_bags, 1)
    ends = jnp.concatenate([offsets[1:].astype(jnp.int32),
                            jnp.array([n_idx], jnp.int32)]).reshape(num_bags, 1)

    vmem = pl.BlockSpec(memory_space=pltpu.MemorySpace.VMEM)
    slab = pl.pallas_call(
        functools.partial(rnn_step_kernel, h_pad=h_pad),
        out_shape=jax.ShapeDtypeStruct((num_bags, h_pad + o_pad), jnp.float32),
        in_specs=[vmem] * 6,
        out_specs=vmem,
    )(gathered, starts, ends, hidden.astype(jnp.float32), w_cat, b_cat)

    hid_new = slab[:, :hidden_size]
    out = slab[:, h_pad:h_pad + output_size]
    return out, hid_new


def reference_forward(embeddings, indices, offsets, hidden,
                      w_i2h, b_i2h, w_i2o, b_i2o):
    n_idx = indices.shape[0]
    ends = jnp.concatenate([offsets[1:], jnp.array([n_idx], jnp.int32)])
    gathered = embeddings[indices]
    idx_pos = jnp.arange(n_idx)[None, :]
    in_bag = ((idx_pos >= offsets[:, None]) & (idx_pos < ends[:, None])).astype(jnp.float32)
    counts = jnp.maximum(jnp.sum(in_bag, axis=1, keepdims=True), 1.0)
    emb = (in_bag / counts) @ gathered
    combined = jnp.concatenate([emb, hidden], axis=1)
    hid_new = combined @ w_i2h.T + b_i2h
    logits = combined @ w_i2o.T + b_i2o
    out = jax.nn.log_softmax(logits, axis=-1)
    return out, hid_new


if __name__ == "__main__":
    # Small, deterministic synthetic setup.
    vocab_size, embed_dim = 50, 16
    hidden_size, output_size = 32, 33
    num_bags, n_idx = 2, 12

    key = jax.random.PRNGKey(0)
    k_emb, k_idx, k_hid, k_w1, k_b1, k_w2, k_b2 = jax.random.split(key, 7)

    embeddings = jax.random.normal(k_emb, (vocab_size, embed_dim), jnp.float32) * 0.1
    indices = jax.random.randint(k_idx, (n_idx,), 0, vocab_size, jnp.int32)
    offsets = jnp.array([0, 7], dtype=jnp.int32)            # self.offset_input
    hidden = jax.random.normal(k_hid, (num_bags, hidden_size), jnp.float32) * 0.1

    fan_in = embed_dim + hidden_size
    w_i2h = jax.random.normal(k_w1, (hidden_size, fan_in), jnp.float32) * 0.05
    b_i2h = jax.random.normal(k_b1, (hidden_size,), jnp.float32) * 0.05
    w_i2o = jax.random.normal(k_w2, (output_size, fan_in), jnp.float32) * 0.05
    b_i2o = jax.random.normal(k_b2, (output_size,), jnp.float32) * 0.05

    # One-time weight preprocessing (hoisted out of the per-step path).
    w_cat, b_cat, dims = prepare_params(w_i2h, b_i2h, w_i2o, b_i2o)

    out, hid_new = rnn_forward(embeddings, indices, offsets, hidden,
                               w_cat, b_cat, dims)
    out = jax.block_until_ready(out)
    hid_new = jax.block_until_ready(hid_new)

    ref_out, ref_hid = reference_forward(embeddings, indices, offsets, hidden,
                                         w_i2h, b_i2h, w_i2o, b_i2o)
    assert out.shape == (num_bags, output_size)
    assert hid_new.shape == (num_bags, hidden_size)
    assert jnp.allclose(out, ref_out, atol=1e-5)
    assert jnp.allclose(hid_new, ref_hid, atol=1e-5)

    # Recurrence sanity check: the same prepared params drive a second step
    # (weight prep is NOT repeated per step).
    out2, hid2 = rnn_forward(embeddings, indices, offsets, hid_new,
                             w_cat, b_cat, dims)
    ref_out2, ref_hid2 = reference_forward(embeddings, indices, offsets, ref_hid,
                                           w_i2h, b_i2h, w_i2o, b_i2o)
    assert jnp.allclose(jax.block_until_ready(out2), ref_out2, atol=1e-5)
    assert jnp.allclose(jax.block_until_ready(hid2), ref_hid2, atol=1e-5)
    print("KERNEL_OK")
</pallas_src>

<mosaic_0001>
module attributes {stable_mosaic.version = 11 : i64} {
  func.func @rnn_step_kernel(%arg0: memref<12x16xf32, #tpu.memory_space<vmem>>, %arg1: memref<2x1xi32, #tpu.memory_space<vmem>>, %arg2: memref<2x1xi32, #tpu.memory_space<vmem>>, %arg3: memref<2x32xf32, #tpu.memory_space<vmem>>, %arg4: memref<48x256xf32, #tpu.memory_space<vmem>>, %arg5: memref<1x256xf32, #tpu.memory_space<vmem>>, %arg6: memref<2x256xf32, #tpu.memory_space<vmem>>) attributes {dimension_semantics = [], scalar_prefetch = 0 : i64, scratch_operands = 0 : i64, tpu.core_type = #tpu.core_type<tc>} {
    %c0 = arith.constant 0 : index
    %c0_0 = arith.constant 0 : index
    %0 = vector.load %arg0[%c0, %c0_0] : memref<12x16xf32, #tpu.memory_space<vmem>>, vector<12x16xf32>
    %c0_1 = arith.constant 0 : index
    %c0_2 = arith.constant 0 : index
    %1 = vector.load %arg3[%c0_1, %c0_2] : memref<2x32xf32, #tpu.memory_space<vmem>>, vector<2x32xf32>
    %c0_3 = arith.constant 0 : index
    %c0_4 = arith.constant 0 : index
    %2 = vector.load %arg1[%c0_3, %c0_4] : memref<2x1xi32, #tpu.memory_space<vmem>>, vector<2x1xi32>
    %c0_5 = arith.constant 0 : index
    %c0_6 = arith.constant 0 : index
    %3 = vector.load %arg2[%c0_5, %c0_6] : memref<2x1xi32, #tpu.memory_space<vmem>>, vector<2x1xi32>
    %4 = tpu.iota {dimensions = array<i32: 1>} : vector<2x12xi32>
    %5 = vector.broadcast %2 : vector<2x1xi32> to vector<2x12xi32>
    %6 = arith.cmpi sge, %4, %5 : vector<2x12xi32>
    %7 = vector.broadcast %3 : vector<2x1xi32> to vector<2x12xi32>
    %8 = arith.cmpi slt, %4, %7 : vector<2x12xi32>
    %9 = arith.andi %6, %8 : vector<2x12xi1>
    %10 = arith.extui %9 : vector<2x12xi1> to vector<2x12xi32>
    %11 = arith.sitofp %10 : vector<2x12xi32> to vector<2x12xf32>
    %cst = arith.constant dense<0.000000e+00> : vector<2xf32>
    %12 = vector.multi_reduction <add>, %11, %cst [1] : vector<2x12xf32> to vector<2xf32>
    %13 = vector.shape_cast %12 : vector<2xf32> to vector<2x1xf32>
    %cst_7 = arith.constant 1.000000e+00 : f32
    %14 = vector.broadcast %cst_7 : f32 to vector<2x1xf32>
    %15 = arith.maximumf %13, %14 : vector<2x1xf32>
    %16 = vector.broadcast %15 : vector<2x1xf32> to vector<2x12xf32>
    %17 = arith.divf %11, %16 : vector<2x12xf32>
    %cst_8 = arith.constant dense<0.000000e+00> : vector<2x16xf32>
    %18 = tpu.matmul %17, %0, %cst_8 {dimension_numbers = #tpu.dot_dimension_numbers<[1], [0], [0], [1], [0, 0, 1, 1], [], []>} : vector<2x12xf32>, vector<12x16xf32>, vector<2x16xf32> -> vector<2x16xf32>
    %19 = tpu.concatenate %18, %1 in 1 : vector<2x16xf32>, vector<2x32xf32> -> vector<2x48xf32>
    %c0_9 = arith.constant 0 : index
    %c0_10 = arith.constant 0 : index
    %20 = vector.load %arg4[%c0_9, %c0_10] : memref<48x256xf32, #tpu.memory_space<vmem>>, vector<48x256xf32>
    %cst_11 = arith.constant dense<0.000000e+00> : vector<2x256xf32>
    %21 = tpu.matmul %19, %20, %cst_11 {dimension_numbers = #tpu.dot_dimension_numbers<[1], [0], [0], [1], [0, 0, 1, 1], [], []>} : vector<2x48xf32>, vector<48x256xf32>, vector<2x256xf32> -> vector<2x256xf32>
    %c0_12 = arith.constant 0 : index
    %c0_13 = arith.constant 0 : index
    %22 = vector.load %arg5[%c0_12, %c0_13] : memref<1x256xf32, #tpu.memory_space<vmem>>, vector<1x256xf32>
    %23 = vector.broadcast %22 : vector<1x256xf32> to vector<2x256xf32>
    %24 = arith.addf %21, %23 : vector<2x256xf32>
    %25 = vector.extract_strided_slice %24 {offsets = [0, 0], sizes = [2, 128], strides = [1, 1]} : vector<2x256xf32> to vector<2x128xf32>
    %26 = vector.extract_strided_slice %24 {offsets = [0, 128], sizes = [2, 128], strides = [1, 1]} : vector<2x256xf32> to vector<2x128xf32>
    %cst_14 = arith.constant dense<0xFF800000> : vector<2xf32>
    %27 = vector.multi_reduction <maximumf>, %26, %cst_14 [1] : vector<2x128xf32> to vector<2xf32>
    %28 = vector.shape_cast %27 : vector<2xf32> to vector<2x1xf32>
    %29 = vector.broadcast %28 : vector<2x1xf32> to vector<2x128xf32>
    %30 = arith.subf %26, %29 : vector<2x128xf32>
    %31 = math.exp %30 : vector<2x128xf32>
    %cst_15 = arith.constant dense<0.000000e+00> : vector<2xf32>
    %32 = vector.multi_reduction <add>, %31, %cst_15 [1] : vector<2x128xf32> to vector<2xf32>
    %33 = vector.shape_cast %32 : vector<2xf32> to vector<2x1xf32>
    %34 = math.log %33 : vector<2x1xf32>
    %35 = vector.broadcast %34 : vector<2x1xf32> to vector<2x128xf32>
    %36 = arith.subf %30, %35 : vector<2x128xf32>
    %37 = tpu.concatenate %25, %36 in 1 : vector<2x128xf32>, vector<2x128xf32> -> vector<2x256xf32>
    %c0_16 = arith.constant 0 : index
    %c0_17 = arith.constant 0 : index
    %38 = vector.load %arg6[%c0_16, %c0_17] : memref<2x256xf32, #tpu.memory_space<vmem>>, vector<2x256xf32>
    tpu.vector_store %arg6[%c0_16, %c0_17], %37 {strides = array<i32>} : memref<2x256xf32, #tpu.memory_space<vmem>>, vector<2x256xf32>,
    return
  }
}

</mosaic_0001>

<bundles_post_ra>
// kernel: tpu_custom_call.1
= control target key start
LH: loop header
LB: loop body
LE: loop exit
PB: predicated region body
PF: predicated region fallthrough
CT: control target
= control target key end

     0   :  { %11 = vsyncpa [#allocation3], 0  ;;  %s396_s0 = inlined_call_operand.hbm [shape: f32[12,16], index: 0, kind: input, shape index: {}]   ;;  %s397_s1 = inlined_call_operand.vmem [shape: s32[2,1], index: 1, kind: input, shape index: {}]   ;;  %s398_s2 = inlined_call_operand.vmem [shape: s32[2,1], index: 2, kind: input, shape index: {}]   ;;  %s399_s3 = inlined_call_operand.vmem [shape: f32[2,32], index: 3, kind: input, shape index: {}]   ;;  %s400_s4 = inlined_call_operand.hbm [shape: f32[48,256], index: 4, kind: input, shape index: {}]   ;;  %s401_s5 = inlined_call_operand.vmem [shape: f32[1,256], index: 5, kind: input, shape index: {}]   ;;  %s402_s6 = inlined_call_operand.hbm [shape: f32[2,256], index: 6, kind: output, shape index: {}]  }
   0x1   :  { %12 = vsyncpa [#allocation6], 0 }
   0x2   :  { %13 = vsyncpa [#allocation4], 0  ;;  %s18_s23 = sshll.u32 %s396_s0, 4  ;;  %s326_s24 = smov [#allocation2]   ;;  %s19_s23 = int_to_ptr.hbm [resolvable:$true] %s18_s23 }
   0x3   :  { %s20_s25 = sshll.u32 %s326_s24, 4  ;;  %s37_s28 = sshll.u32 %s400_s4, 4  ;;  %s21_s25 = int_to_ptr.vmem [resolvable:$true] %s20_s25  ;;  %s38_s28 = int_to_ptr.hbm [resolvable:$true] %s37_s28 }
   0x4   :  { %s327_s29 = smov 128   ;;  %s328_s30 = smov 8  }
   0x5   :  { %26 = dma.hbm_to_vmem [thread:$0]  %s19_s23, 256, %s21_s25, [#allocation3], %s327_s29, %s327_s29, %s328_s30  }
   0x6   :  { %s329_s7 = smov [#allocation5]   ;;  %s330_s9 = smov 256  }
   0x7   :  { %s39_s8 = sshll.u32 %s329_s7, 4  ;;  %s331_s10 = smov 16   ;;  %s40_s8 = int_to_ptr.vmem [resolvable:$true] %s39_s8 }
   0x8   :  { %45 = dma.hbm_to_vmem [thread:$0]  %s38_s28, 1536, %s40_s8, [#allocation6], %s330_s9, %s330_s9, %s331_s10  }
   0x9   :  { %320 = dma.done.wait [#allocation3], 256  }
   0xa   :  { %321 = vsyncadd [#allocation3], 4294967040 }
   0xb   :  { %322 = dma.done.wait [#allocation6], 1536  }
   0xc   :  { %323 = vsyncadd [#allocation6], 4294965760  ;;  %v332_v0 = vmov 0   ;;  %v59_v1 = vld [vmem:[%s397_s1] sm:$0x3]  ;;  %v61_v4 = vlaneseq  ;;  %vm74_vm2 = vcmask 91136  }
   0xd   :  { %241 = vset.pattern.permute.xlu0 %v332_v0  ;;  %v60_v2 = vld [vmem:[%s398_s2] sm:$0x3]  ;;  %v333_v7 = vmov 0.0   ;;  %v57_v10 = vld [vmem:[#allocation2 + $0x8] sm:$0xf]  ;;  %vm98_vm4 = vcmask 1043456  }
   0xe   :  { %64 = vperm.xlu0 %241, %v59_v1   ;;  %v62_v5 = vand.u32 127, %v61_v4  ;;  %v56_v11 = vld [vmem:[#allocation2] sm:$0xff]  ;;  %228 = vmatpush.msk.msra.mxu0 %vm98_vm4, %v57_v10  ;;  %v139_v14 = vld [vmem:[#allocation5 + $0x58] sm:$0xff]  ;;  %v136_v15 = vld [vmem:[#allocation5 + $0x40] sm:$0xff]  ;;  %vm94_vm9 = vcmask 97280   ;;  %vm126_vm10 = vcmask 130048  }
   0xf   :  { %v58_v12 = vld [vmem:[%s399_s3] sm:$0x3]  ;;  %v137_v16 = vld [vmem:[#allocation5 + $0x48] sm:$0xff]  ;;  %180 = vmatpush.msra.mxu2 %v139_v14  ;;  %v135_v18 = vld [vmem:[#allocation5 + $0x38] sm:$0xff]  ;;  %vm146_vm11 = vcmask 392192   ;;  %vm190_vm12 = vcmask 1041408  }
  0x10   :  { %117 = vmatpush.msra.mxu0 %v56_v11  ;;  %v138_v13 = vld [vmem:[#allocation5 + $0x50] sm:$0xff]  ;;  %v132_v19 = vld [vmem:[#allocation5 + $0x20] sm:$0xff]  ;;  %v133_v20 = vld [vmem:[#allocation5 + $0x28] sm:$0xff]  ;;  %s216_s17 = sshll.u32 %s402_s6, 4  ;;  %s217_s17 = int_to_ptr.hbm [resolvable:$true] %s216_s17 }
  0x11   :  { %160 = vmatpush.msra.mxu1 %v138_v13  ;;  %v134_v17 = vld [vmem:[#allocation5 + $0x30] sm:$0xff]  ;;  %181 = vmatpush.msra.mxu2 %v137_v16  ;;  %v131_v22 = vld [vmem:[#allocation5 + $0x18] sm:$0xff]  ;;  %v128_v36 = vld [vmem:[#allocation5] sm:$0xff] }
  0x12   :  { %v130_v21 = vld [vmem:[#allocation5 + $0x10] sm:$0xff]  ;;  %v129_v37 = vld [vmem:[#allocation5 + $0x8] sm:$0xff] }
  0x13   :  { %161 = vmatpush.msra.mxu1 %v136_v15  ;;  %182 = vmatpush.msra.mxu2 %v135_v18  ;;  %v140_v41 = vld [vmem:[%s401_s5] sm:$0x3]  ;;  %s334_s5 = smov [#allocation7]  }
  0x14   :  { %v143_v42 = vperm.slane %v140_v41, 1  ;;  %v142_v53 = vperm.slane %v140_v41, 0  ;;  %s214_s14 = sshll.u32 %s334_s5, 4  ;;  %s215_s14 = int_to_ptr.vmem [resolvable:$true] %s214_s14 }
  0x15   :  { %162 = vmatpush.msra.mxu1 %v134_v17  ;;  %183 = vmatpush.msra.mxu2 %v133_v20 }
  0x16   :  { %68 = vperm.xlu0 %241, %v60_v2  }
  0x17   :  { %163 = vmatpush.msra.mxu1 %v132_v19  ;;  %184 = vmatpush.msra.mxu2 %v131_v22 }
  0x19   :  { %164 = vmatpush.msra.mxu1 %v130_v21  ;;  %185 = vmatpush.msra.mxu2 %v129_v37 }
  0x1b   :  { %165 = vmatpush.msra.mxu1 %v128_v36 }
  0x80   :  { %v65_v3 = vpop.permute.xlu0 %64 }
  0x81   :  { %vm66_vm0 = vcmp.ge.s32.totalorder %v62_v5, %v65_v3 }
  0x88   :  { %v69_v6 = vpop.permute.xlu0 %68 }
  0x89   :  { %vm70_vm1 = vcmp.lt.s32.totalorder %v62_v5, %v69_v6 }
  0x8a   :  { %vm71_vm3 = vmand %vm66_vm0, %vm70_vm1 }
  0x8b   :  { %v227_v8 = vsel %vm71_vm3, 1.0, %v333_v7 }
  0x8c   :  { %v75_v9 = vsel %vm74_vm2, %v227_v8, 0.0 }
  0x8d   :  { %76 = vadd.xlane.f32.xlu1 %v75_v9 }
  0xa6   :  { %123 = vrot.lane.b32.xlu1 %v58_v12, %s331_s10 }
 0x100   :  { %v77_v23 = vpop.xlane.xlu1 %76 }
 0x101   :  { %v78_v24 = vmax.f32 %v77_v23, 1.0 }
 0x103   :  { %242 = vrcp.f32 %v78_v24  ;;  %v90_v28 = vand.u32 2147483648, %v78_v24  ;;  %v88_v30 = vand.u32 2147483647, %v78_v24  ;;  %vm84_vm6 = vweird.f32 %v78_v24 }
 0x105   :  { %v91_v32 = vor.u32 1.1754944e-38, %v90_v28  ;;  %vm89_vm8 = vcmp.eq.f32.partialorder %v88_v30, 8.507059e+37 }
 0x109   :  { %v243_v25 = vpop.eup %242 }
 0x10a   :  { %v80_v26 = vmul.f32 %v243_v25, %v78_v24  ;;  %vm85_vm5 = vweird.f32 %v243_v25 }
 0x10b   :  { %vm86_vm7 = vmor %vm84_vm6, %vm85_vm5 }
 0x10c   :  { %v81_v27 = vsub.f32 1.0, %v80_v26 }
 0x10e   :  { %v82_v29 = vmul.f32 %v243_v25, %v81_v27 }
 0x110   :  { %v83_v31 = vadd.f32 %v243_v25, %v82_v29 }
 0x112   :  { %v87_v33 = vsel %vm86_vm7, %v243_v25, %v83_v31 }
 0x113   :  { %v92_v34 = vsel %vm89_vm8, %v91_v32, %v87_v33 }
 0x114   :  { %v93_v35 = vmul.f32 %v227_v8, %v92_v34 }
 0x116   :  { %229 = vmatmul.msk.f32.vlgmr.msra.gmra.mxu0 %vm94_vm9, %v93_v35 }
 0x118   :  { %v124_v38 = vpop.permute.xlu1 %123 }
 0x193   :  { %v119_v39 = vpop.f32.mrf.mxu0 }
 0x194   :  { %v127_v40 = vsel %vm126_vm10, %v119_v39, %v124_v38 }
 0x195   :  { %230 = vmatmul.msk.f32.vlgmr.msra.gmra.mxu1 %vm146_vm11, %v127_v40  ;;  %231 = vmatmul.msk.f32.vlgmr.msra.gmra.mxu2 %vm146_vm11, %v127_v40 }
 0x212   :  { %v167_v55 = vpop.f32.mrf.mxu1 }
 0x213   :  { %v168_v57 = vadd.f32 %v167_v55, %v142_v53 }
 0x218   :  { %v187_v43 = vpop.f32.mrf.mxu2 }
 0x219   :  { %v188_v44 = vadd.f32 %v187_v43, %v143_v42 }
 0x21b   :  { %v191_v45 = vsel %vm190_vm12, %v188_v44, -inf }
 0x21c   :  { %192 = vmax.xlane.f32.xlu2 %v191_v45 }
 0x28f   :  { %v193_v46 = vpop.xlane.xlu2 %192 }
 0x290   :  { %v194_v47 = vsub.f32 %v188_v44, %v193_v46 }
 0x292   :  { %v195_v48 = vmul.f32 1.442695, %v194_v47 }
 0x294   :  { %244 = vpow2.f32 %v195_v48 }
 0x29a   :  { %v245_v49 = vpop.eup %244 }
 0x29b   :  { %v197_v50 = vsel %vm190_vm12, %v245_v49, 0.0 }
 0x29c   :  { %198 = vadd.xlane.f32.xlu2 %v197_v50 }
 0x30f   :  { %v199_v51 = vpop.xlane.xlu2 %198 }
 0x310   :  { %246 = vlog2.f32 %v199_v51 }
 0x316   :  { %v247_v52 = vpop.eup %246 }
 0x317   :  { %v201_v54 = vmul.f32 0.6931472, %v247_v52 }
 0x319   :  { %v202_v56 = vsub.f32 %v194_v47, %v201_v54 }
 0x31b   :  { %v205_v58 = vrot.slane %v202_v56, 6 }
 0x31d   :  { %v206_v59 = vsel %vm190_vm12, %v168_v57, %v205_v58 }
 0x31e   :  { %208 = vst [vmem:[#allocation7] sm:$0xf] %v206_v59 }
 0x31f   :  { %219 = dma.vmem_to_hbm [thread:$0]  %s215_s14, 64, %s217_s17, [#allocation4]  }
 0x320   :  { %324 = dma.done.wait [#allocation4], 64  }
 0x321   :  { %325 = vsyncadd [#allocation4], 4294967232 }
 0x322   :  { %224 = vsyncpa [#allocation3], 1 }
 0x323   :  { %225 = vsyncpa [#allocation6], 1 }
 0x324   :  { %226 = vsyncpa [#allocation4], 1 }

</bundles_post_ra>
